<compile_context>
chip_gen: v7x
topology: tpu7x:2x2x1
jax: 0.10.0
libtpu: 0.0.40
codegen_flags: <defaults>
</compile_context>

<pallas_src>
import functools

import jax
import jax.numpy as jnp
from jax.experimental import pallas as pl
from jax.experimental.pallas import tpu as pltpu

_LANES = 128
_SUBLANES = 8
_GROUP = _SUBLANES * _LANES            # one (8, 128) f32 vreg = 1024 elements
_MAX_GROUPS_PER_BLOCK = 512            # 512 * 4 KiB = 2 MiB f32 per streamed tile
_VMEM_LIMIT_BYTES = 48 * 1024 * 1024   # safe on v5e/v6e (128 MiB) and v7x (64 MiB)


# ---------------------------------------------------------------------------
# Kernel 1: whole problem fits a single VMEM block -> one invocation does the
# masked max AND the BerHu reduction, so pred/gt are read from HBM only once.
# ---------------------------------------------------------------------------
def _berhu_resident_kernel(tail_max_ref, pred_ref, gt_ref,
                           sum_ref, cnt_ref, thr_ref, *, eps, scale):
    p = pred_ref[...].astype(jnp.float32)     # upcast per-tile (narrow dtypes
    g = gt_ref[...].astype(jnp.float32)       # stay narrow on the HBM side)
    valid = g > eps
    d = p - g
    diff = jnp.abs(d)
    diff_m = jnp.where(valid, diff, jnp.float32(0.0))     # diff >= 0 -> neutral

    # VALU fold over the leading group axis to one (8, 128) vreg, then a
    # single cross-lane reduce; combine with the jnp-side ragged-tail max.
    thr = scale * jnp.maximum(jnp.max(jnp.max(diff_m, axis=0)),
                              tail_max_ref[0, 0])

    inv = 1.0 / (2.0 * thr + eps)             # one scalar divide, hoisted
    quad = (d * d + thr * thr) * inv
    berhu = jnp.where(diff > thr, quad, diff)
    berhu = jnp.where(valid, berhu, jnp.float32(0.0))

    sum_ref[0, 0] = jnp.sum(jnp.sum(berhu, axis=0))
    cnt_ref[0, 0] = jnp.sum(jnp.sum(valid.astype(jnp.float32), axis=0))
    thr_ref[0, 0] = thr


# ---------------------------------------------------------------------------
# Kernels 2a/2b: problem larger than one VMEM block.  Two calls whose block
# axis is "parallel" (megacore-shardable on v7x); each block emits small
# lane-dense partial results combined outside with a trivial jnp reduction.
# ---------------------------------------------------------------------------
def _berhu_max_kernel(pred_ref, gt_ref, pmax_ref, pcnt_ref,
                      *, eps, n_groups, groups_per_block):
    blk = pl.program_id(0)
    p = pred_ref[...].astype(jnp.float32)
    g = gt_ref[...].astype(jnp.float32)
    valid = g > eps
    if n_groups % groups_per_block:           # static: only if a partial last
        gids = jax.lax.broadcasted_iota(jnp.int32, p.shape, 0)  # block exists
        valid = jnp.logical_and(valid, blk * groups_per_block + gids < n_groups)
    diff_m = jnp.where(valid, jnp.abs(p - g), jnp.float32(0.0))
    pmax_ref[0] = jnp.max(diff_m, axis=0)
    # valid-count emitted from this (light) pass so the BerHu pass carries a
    # single store per block.
    pcnt_ref[0] = jnp.sum(valid.astype(jnp.float32), axis=0)


def _berhu_sum_kernel(thr_ref, pred_ref, gt_ref, psum_ref,
                      *, eps, n_groups, groups_per_block):
    blk = pl.program_id(0)
    thr = thr_ref[0, 0]
    p = pred_ref[...].astype(jnp.float32)
    g = gt_ref[...].astype(jnp.float32)
    valid = g > eps
    if n_groups % groups_per_block:
        gids = jax.lax.broadcasted_iota(jnp.int32, p.shape, 0)
        valid = jnp.logical_and(valid, blk * groups_per_block + gids < n_groups)
    d = p - g
    diff = jnp.abs(d)
    inv = 1.0 / (2.0 * thr + eps)             # hoisted scalar reciprocal
    quad = (d * d + thr * thr) * inv
    berhu = jnp.where(diff > thr, quad, diff)
    berhu = jnp.where(valid, berhu, jnp.float32(0.0))
    psum_ref[0] = jnp.sum(berhu, axis=0)


@functools.partial(jax.jit,
                   static_argnames=("scale", "eps", "max_groups_per_block"))
def berhu_loss(pred, gt, scale=0.5, eps=1e-5,
               max_groups_per_block=_MAX_GROUPS_PER_BLOCK):
    """Pallas TPU implementation of BerHuLoss.forward(pred, gt)."""
    p_flat = pred.reshape(-1)
    g_flat = gt.reshape(-1)
    if not jnp.issubdtype(p_flat.dtype, jnp.floating):
        p_flat = p_flat.astype(jnp.float32)
    if not jnp.issubdtype(g_flat.dtype, jnp.floating):
        g_flat = g_flat.astype(jnp.float32)
    n = p_flat.shape[0]

    n_groups = n // _GROUP
    rem = n - n_groups * _GROUP

    if n_groups == 0:
        # Tiny input (< 1024 elems): pad to one (8, 128) group.  gt pads with
        # 0 <= eps, so padded slots are invalid and contribute nothing.
        pad = _GROUP - n
        p_main = jnp.pad(p_flat, (0, pad)).reshape(1, _SUBLANES, _LANES)
        g_main = jnp.pad(g_flat, (0, pad)).reshape(1, _SUBLANES, _LANES)
        n_groups, rem = 1, 0
    else:
        body = n_groups * _GROUP
        # Prefix slice + reshape of contiguous memory -- no full-array pad
        # copies are forced onto the pallas_call operands.
        p_main = p_flat[:body].reshape(n_groups, _SUBLANES, _LANES)
        g_main = g_flat[:body].reshape(n_groups, _SUBLANES, _LANES)

    # <= 1023-element ragged tail handled with a few plain-jnp ops on the tail
    # slice only (instead of padding/copying the full arrays).
    if rem:
        t_p = p_flat[n_groups * _GROUP:].astype(jnp.float32)
        t_g = g_flat[n_groups * _GROUP:].astype(jnp.float32)
        t_valid = t_g > eps
        t_d = t_p - t_g
        t_diff = jnp.abs(t_d)
        tail_max = jnp.max(jnp.where(t_valid, t_diff, jnp.float32(0.0)))
    else:
        tail_max = jnp.float32(0.0)
    tail_max = jnp.asarray(tail_max, jnp.float32).reshape(1, 1)

    groups_per_block = min(n_groups, max_groups_per_block)
    nblk = pl.cdiv(n_groups, groups_per_block)

    def smem11():
        return pl.BlockSpec((1, 1), lambda i: (0, 0), memory_space=pltpu.SMEM)

    if nblk == 1:
        # ---- single VMEM-resident block: fused kernel, one HBM read. -------
        main_sum, main_cnt, thr = pl.pallas_call(
            functools.partial(_berhu_resident_kernel, eps=eps, scale=scale),
            out_shape=(jax.ShapeDtypeStruct((1, 1), jnp.float32),
                       jax.ShapeDtypeStruct((1, 1), jnp.float32),
                       jax.ShapeDtypeStruct((1, 1), jnp.float32)),
            grid=(1,),
            in_specs=[
                smem11(),
                pl.BlockSpec((n_groups, _SUBLANES, _LANES), lambda i: (0, 0, 0)),
                pl.BlockSpec((n_groups, _SUBLANES, _LANES), lambda i: (0, 0, 0)),
            ],
            out_specs=(smem11(), smem11(), smem11()),
            compiler_params=pltpu.CompilerParams(
                dimension_semantics=("arbitrary",),
                vmem_limit_bytes=_VMEM_LIMIT_BYTES),
        )(tail_max, p_main, g_main)
        main_sum = main_sum[0, 0]
        main_cnt = main_cnt[0, 0]
        thr_s = thr[0, 0]
    else:
        # ---- two streamed passes; block axis "parallel" (megacore on v7x). -
        tile = pl.BlockSpec((groups_per_block, _SUBLANES, _LANES),
                            lambda i: (i, 0, 0))
        part = pl.BlockSpec((1, _SUBLANES, _LANES), lambda i: (i, 0, 0))
        cparams = pltpu.CompilerParams(
            dimension_semantics=("parallel",),
            vmem_limit_bytes=_VMEM_LIMIT_BYTES)

        pmax, pcnt = pl.pallas_call(
            functools.partial(_berhu_max_kernel, eps=eps, n_groups=n_groups,
                              groups_per_block=groups_per_block),
            out_shape=(jax.ShapeDtypeStruct((nblk, _SUBLANES, _LANES), jnp.float32),
                       jax.ShapeDtypeStruct((nblk, _SUBLANES, _LANES), jnp.float32)),
            grid=(nblk,),
            in_specs=[tile, tile],
            out_specs=(part, part),
            compiler_params=cparams,
        )(p_main, g_main)

        thr_s = scale * jnp.maximum(jnp.max(pmax), tail_max[0, 0])

        psum = pl.pallas_call(
            functools.partial(_berhu_sum_kernel, eps=eps, n_groups=n_groups,
                              groups_per_block=groups_per_block),
            out_shape=jax.ShapeDtypeStruct((nblk, _SUBLANES, _LANES), jnp.float32),
            grid=(nblk,),
            in_specs=[smem11(), tile, tile],
            out_specs=part,
            compiler_params=cparams,
        )(thr_s.reshape(1, 1), p_main, g_main)

        main_sum = jnp.sum(psum)
        main_cnt = jnp.sum(pcnt)

    if rem:
        t_quad = (t_d * t_d + thr_s * thr_s) / (2.0 * thr_s + eps)
        t_berhu = jnp.where(t_diff > thr_s, t_quad, t_diff)
        t_berhu = jnp.where(t_valid, t_berhu, jnp.float32(0.0))
        total_sum = main_sum + jnp.sum(t_berhu)
        total_cnt = main_cnt + jnp.sum(t_valid.astype(jnp.float32))
    else:
        total_sum, total_cnt = main_sum, main_cnt

    # NOTE: an all-invalid input gives 0/0 -> NaN, matching the reference.
    return (total_sum / total_cnt).astype(jnp.float32)


def _berhu_loss_ref(pred, gt, scale=0.5, eps=1e-5):
    """Pure-JAX reference mirroring the PyTorch module (for verification)."""
    p = pred.reshape(-1).astype(jnp.float32)
    g = gt.reshape(-1).astype(jnp.float32)
    valid = g > eps
    d = p - g
    diff = jnp.abs(d)
    thr = scale * jnp.max(jnp.where(valid, diff, 0.0))
    quad = (d * d + thr * thr) / (2.0 * thr + eps)
    berhu = jnp.where(diff > thr, quad, diff)
    berhu = jnp.where(valid, berhu, 0.0)
    return jnp.sum(berhu) / jnp.sum(valid.astype(jnp.float32))


if __name__ == "__main__":
    key = jax.random.PRNGKey(0)

    # (shape, max_groups_per_block override) -- override forces the
    # multi-block "parallel" split path at small test sizes.
    cases = [
        ((2, 4, 16, 16), None),    # fused single-block, numel % 1024 == 0
        ((2, 3, 15, 17), None),    # fused single-block + ragged jnp tail
        ((1, 1, 360, 400), 16),    # split path: 9 blocks, partial last block, tail
        ((2, 4, 8, 8), None),      # tiny (< one vreg group) padding path
    ]

    for idx, (shape, max_gpb) in enumerate(cases):
        k1, k2 = jax.random.split(jax.random.fold_in(key, idx))
        # NCHW inputs, as the PyTorch module would receive (e.g. depth maps).
        pred = jax.random.normal(k1, shape, dtype=jnp.float32) * 0.5 + 1.0
        # gt: mostly positive, some entries <= eps to exercise the validity mask.
        gt = jax.random.uniform(k2, shape, dtype=jnp.float32) * 1.5 - 0.2

        kwargs = {} if max_gpb is None else {"max_groups_per_block": max_gpb}
        loss = jax.block_until_ready(berhu_loss(pred, gt, **kwargs))
        ref = jax.block_until_ready(_berhu_loss_ref(pred, gt))

        assert jnp.isfinite(loss), f"loss not finite for {shape}"
        assert jnp.allclose(loss, ref, rtol=1e-4, atol=1e-5), (
            f"mismatch for {shape}: pallas={float(loss)}, ref={float(ref)}")

    print("KERNEL_OK")
</pallas_src>

<mosaic_0001>
module attributes {stable_mosaic.version = 11 : i64} {
  func.func @_berhu_resident_kernel(%arg0: i32, %arg1: memref<1x1xf32, #tpu.memory_space<smem>>, %arg2: memref<2x8x128xf32, #tpu.memory_space<vmem>>, %arg3: memref<2x8x128xf32, #tpu.memory_space<vmem>>, %arg4: memref<1x1xf32, #tpu.memory_space<smem>>, %arg5: memref<1x1xf32, #tpu.memory_space<smem>>, %arg6: memref<1x1xf32, #tpu.memory_space<smem>>) attributes {dimension_semantics = [#tpu.dimension_semantics<arbitrary>], iteration_bounds = array<i64: 1>, scalar_prefetch = 0 : i64, scratch_operands = 0 : i64, tpu.core_type = #tpu.core_type<tc>, window_params = [{transform_indices = @transform_0, window_bounds = array<i64: 1, 1>}, {pipeline_mode = #tpu.pipeline_mode<synchronous>, transform_indices = @transform_1, window_bounds = array<i64: 2, 8, 128>}, {pipeline_mode = #tpu.pipeline_mode<synchronous>, transform_indices = @transform_2, window_bounds = array<i64: 2, 8, 128>}, {transform_indices = @transform_3, window_bounds = array<i64: 1, 1>}, {transform_indices = @transform_4, window_bounds = array<i64: 1, 1>}, {transform_indices = @transform_5, window_bounds = array<i64: 1, 1>}]} {
    %c0 = arith.constant 0 : index
    %c0_0 = arith.constant 0 : index
    %c0_1 = arith.constant 0 : index
    %0 = vector.load %arg2[%c0, %c0_0, %c0_1] : memref<2x8x128xf32, #tpu.memory_space<vmem>>, vector<2x8x128xf32>
    %c0_2 = arith.constant 0 : index
    %c0_3 = arith.constant 0 : index
    %c0_4 = arith.constant 0 : index
    %1 = vector.load %arg3[%c0_2, %c0_3, %c0_4] : memref<2x8x128xf32, #tpu.memory_space<vmem>>, vector<2x8x128xf32>
    %cst = arith.constant 9.99999974E-6 : f32
    %2 = vector.broadcast %cst : f32 to vector<2x8x128xf32>
    %3 = arith.cmpf ogt, %1, %2 : vector<2x8x128xf32>
    %4 = arith.subf %0, %1 : vector<2x8x128xf32>
    %5 = math.absf %4 : vector<2x8x128xf32>
    %cst_5 = arith.constant 0.000000e+00 : f32
    %6 = vector.broadcast %cst_5 : f32 to vector<2x8x128xf32>
    %7 = arith.select %3, %5, %6 : vector<2x8x128xi1>, vector<2x8x128xf32>
    %cst_6 = arith.constant dense<0xFF800000> : vector<8x128xf32>
    %8 = vector.multi_reduction <maximumf>, %7, %cst_6 [0] : vector<2x8x128xf32> to vector<8x128xf32>
    %9 = vector.shape_cast %8 : vector<8x128xf32> to vector<1x8x128xf32>
    %cst_7 = arith.constant dense<0xFF800000> : vector<1xf32>
    %10 = vector.multi_reduction <maximumf>, %9, %cst_7 [1, 2] : vector<1x8x128xf32> to vector<1xf32>
    %11 = vector.shape_cast %10 : vector<1xf32> to vector<1x1x1xf32>
    %12 = vector.extract %11[0, 0, 0] : f32 from vector<1x1x1xf32>
    %c0_8 = arith.constant 0 : index
    %c0_9 = arith.constant 0 : index
    %13 = memref.load %arg1[%c0_8, %c0_9] : memref<1x1xf32, #tpu.memory_space<smem>>
    %14 = arith.maximumf %12, %13 : f32
    %cst_10 = arith.constant 5.000000e-01 : f32
    %15 = arith.mulf %cst_10, %14 : f32
    %cst_11 = arith.constant 2.000000e+00 : f32
    %16 = arith.mulf %cst_11, %15 : f32
    %cst_12 = arith.constant 9.99999974E-6 : f32
    %17 = arith.addf %16, %cst_12 : f32
    %cst_13 = arith.constant 1.000000e+00 : f32
    %18 = arith.divf %cst_13, %17 : f32
    %19 = arith.mulf %4, %4 : vector<2x8x128xf32>
    %20 = arith.mulf %15, %15 : f32
    %21 = vector.broadcast %20 : f32 to vector<2x8x128xf32>
    %22 = arith.addf %19, %21 : vector<2x8x128xf32>
    %23 = vector.broadcast %18 : f32 to vector<2x8x128xf32>
    %24 = arith.mulf %22, %23 : vector<2x8x128xf32>
    %25 = vector.broadcast %15 : f32 to vector<2x8x128xf32>
    %26 = arith.cmpf ogt, %5, %25 : vector<2x8x128xf32>
    %27 = arith.select %26, %24, %5 : vector<2x8x128xi1>, vector<2x8x128xf32>
    %cst_14 = arith.constant 0.000000e+00 : f32
    %28 = vector.broadcast %cst_14 : f32 to vector<2x8x128xf32>
    %29 = arith.select %3, %27, %28 : vector<2x8x128xi1>, vector<2x8x128xf32>
    %cst_15 = arith.constant dense<0.000000e+00> : vector<8x128xf32>
    %30 = vector.multi_reduction <add>, %29, %cst_15 [0] : vector<2x8x128xf32> to vector<8x128xf32>
    %31 = vector.shape_cast %30 : vector<8x128xf32> to vector<1x8x128xf32>
    %cst_16 = arith.constant dense<0.000000e+00> : vector<1xf32>
    %32 = vector.multi_reduction <add>, %31, %cst_16 [1, 2] : vector<1x8x128xf32> to vector<1xf32>
    %33 = vector.shape_cast %32 : vector<1xf32> to vector<1x1x1xf32>
    %34 = vector.extract %33[0, 0, 0] : f32 from vector<1x1x1xf32>
    %c0_17 = arith.constant 0 : index
    %c0_18 = arith.constant 0 : index
    %35 = memref.load %arg4[%c0_17, %c0_18] : memref<1x1xf32, #tpu.memory_space<smem>>
    memref.store %34, %arg4[%c0_17, %c0_18] : memref<1x1xf32, #tpu.memory_space<smem>>
    %36 = arith.extui %3 : vector<2x8x128xi1> to vector<2x8x128xi32>
    %37 = arith.sitofp %36 : vector<2x8x128xi32> to vector<2x8x128xf32>
    %cst_19 = arith.constant dense<0.000000e+00> : vector<8x128xf32>
    %38 = vector.multi_reduction <add>, %37, %cst_19 [0] : vector<2x8x128xf32> to vector<8x128xf32>
    %39 = vector.shape_cast %38 : vector<8x128xf32> to vector<1x8x128xf32>
    %cst_20 = arith.constant dense<0.000000e+00> : vector<1xf32>
    %40 = vector.multi_reduction <add>, %39, %cst_20 [1, 2] : vector<1x8x128xf32> to vector<1xf32>
    %41 = vector.shape_cast %40 : vector<1xf32> to vector<1x1x1xf32>
    %42 = vector.extract %41[0, 0, 0] : f32 from vector<1x1x1xf32>
    %c0_21 = arith.constant 0 : index
    %c0_22 = arith.constant 0 : index
    %43 = memref.load %arg5[%c0_21, %c0_22] : memref<1x1xf32, #tpu.memory_space<smem>>
    memref.store %42, %arg5[%c0_21, %c0_22] : memref<1x1xf32, #tpu.memory_space<smem>>
    %c0_23 = arith.constant 0 : index
    %c0_24 = arith.constant 0 : index
    %44 = memref.load %arg6[%c0_23, %c0_24] : memref<1x1xf32, #tpu.memory_space<smem>>
    memref.store %15, %arg6[%c0_23, %c0_24] : memref<1x1xf32, #tpu.memory_space<smem>>
    return
  }
  func.func @transform_0(%arg0: i32) -> (i32, i32) {
    %c0_i32 = arith.constant 0 : i32
    %c0_i32_0 = arith.constant 0 : i32
    %c0_i32_1 = arith.constant 0 : i32
    return %c0_i32, %c0_i32_0 : i32, i32
  }
  func.func @transform_1(%arg0: i32) -> (i32, i32, i32) {
    %c0_i32 = arith.constant 0 : i32
    %c0_i32_0 = arith.constant 0 : i32
    %c0_i32_1 = arith.constant 0 : i32
    %c0_i32_2 = arith.constant 0 : i32
    return %c0_i32, %c0_i32_0, %c0_i32_1 : i32, i32, i32
  }
  func.func @transform_2(%arg0: i32) -> (i32, i32, i32) {
    %c0_i32 = arith.constant 0 : i32
    %c0_i32_0 = arith.constant 0 : i32
    %c0_i32_1 = arith.constant 0 : i32
    %c0_i32_2 = arith.constant 0 : i32
    return %c0_i32, %c0_i32_0, %c0_i32_1 : i32, i32, i32
  }
  func.func @transform_3(%arg0: i32) -> (i32, i32) {
    %c0_i32 = arith.constant 0 : i32
    %c0_i32_0 = arith.constant 0 : i32
    %c0_i32_1 = arith.constant 0 : i32
    return %c0_i32, %c0_i32_0 : i32, i32
  }
  func.func @transform_4(%arg0: i32) -> (i32, i32) {
    %c0_i32 = arith.constant 0 : i32
    %c0_i32_0 = arith.constant 0 : i32
    %c0_i32_1 = arith.constant 0 : i32
    return %c0_i32, %c0_i32_0 : i32, i32
  }
  func.func @transform_5(%arg0: i32) -> (i32, i32) {
    %c0_i32 = arith.constant 0 : i32
    %c0_i32_0 = arith.constant 0 : i32
    %c0_i32_1 = arith.constant 0 : i32
    return %c0_i32, %c0_i32_0 : i32, i32
  }
}

</mosaic_0001>

<bundles_post_ra>
// kernel: berhu_loss.1
= control target key start
LH: loop header
LB: loop body
LE: loop exit
PB: predicated region body
PF: predicated region fallthrough
CT: control target
= control target key end

     0   :  { %12 = vsyncpa [#allocation4], 0  ;;  %s273_s0 = inlined_call_operand.<no memory space> [shape: f32[1,1], index: 0, kind: input, shape index: {}]   ;;  %s274_s1 = inlined_call_operand.vmem [shape: f32[2,8,128], index: 1, kind: input, shape index: {}]   ;;  %s275_s2 = inlined_call_operand.vmem [shape: f32[2,8,128], index: 2, kind: input, shape index: {}]   ;;  %s276_s3 = inlined_call_operand.hbm [shape: f32[1,1], index: 3, kind: output, shape index: {0}]   ;;  %s277_s4 = inlined_call_operand.hbm [shape: f32[1,1], index: 4, kind: output, shape index: {1}]   ;;  %s278_s5 = inlined_call_operand.hbm [shape: f32[1,1], index: 5, kind: output, shape index: {2}]  }
   0x1   :  { %v20_v0 = vld [vmem:[%s274_s1] sm:$0xff]  ;;  %v21_v1 = vld [vmem:[%s274_s1 + $0x8] sm:$0xff] }
   0x2   :  { %v22_v2 = vld [vmem:[%s275_s2] sm:$0xff]  ;;  %v23_v3 = vld [vmem:[%s275_s2 + $0x8] sm:$0xff] }
   0x3   :  { %v26_v4 = vsub.f32 %v20_v0, %v22_v2 }
   0x4   :  { %13 = vsyncpa [#allocation6], 0  ;;  %vm24_vm0 = vcmp.gt.f32.partialorder %v22_v2, 1e-05  ;;  %v27_v5 = vsub.f32 %v21_v1, %v23_v3  ;;  %vm25_vm1 = vcmp.gt.f32.partialorder %v23_v3, 1e-05 }
   0x5   :  { %v28_v6 = vand.u32 2147483647, %v26_v4  ;;  %v182_v14 = vmov 0.0   ;;  %v50_v24 = vmul.f32 %v26_v4, %v26_v4  ;;  %s148_s11 = scalar_lea.hbm %s277_s4, 16 }
   0x6   :  { %v29_v7 = vand.u32 2147483647, %v27_v5  ;;  %v132_v15 = vsel %vm24_vm0, 1.0, %v182_v14  ;;  %v133_v16 = vsel %vm25_vm1, 1.0, %v182_v14  ;;  %v51_v25 = vmul.f32 %v27_v5, %v27_v5  ;;  %p149_p0 = scmp.ne.s32.totalorder %s277_s4, %s148_s11  ;;  %p152_p1 = scmp.lt.u32.totalorder %s148_s11, %s277_s4 }
   0x7   :  { %v30_v8 = vsel %vm24_vm0, %v28_v6, 0.0  ;;  %v82_v17 = vadd.f32 %v133_v16, %v132_v15 }
   0x8   :  { %v31_v9 = vsel %vm25_vm1, %v29_v7, 0.0  ;;  %p154_p2 = pnand %p152_p1, %p149_p0 }
   0x9   :  { %v32_v10 = vmax.f32 %v30_v8, %v31_v9  ;;  %83 = vadd.xlane.f32.xlu1 %v82_v17 }
   0xb   :  { %33 = vmax.xlane.f32.xlu0 %v32_v10 }
  0x96   :  { %v84_v38 = vpop.xlane.xlu1 %83 }
  0x97   :  { %v85_v39 = vrot.slane %v84_v38, 4 }
  0x98   :  { %v34_v11 = vpop.xlane.xlu0 %33 }
  0x99   :  { %v35_v12 = vrot.slane %v34_v11, 4  ;;  %v86_v40 = vadd.f32 %v85_v39, %v84_v38 }
  0x9b   :  { %v36_v13 = vmax.f32 %v34_v11, %v35_v12  ;;  %v87_v41 = vrot.slane %v86_v40, 2 }
  0x9d   :  { %v37_v18 = vrot.slane %v36_v13, 2  ;;  %v88_v45 = vadd.f32 %v87_v41, %v86_v40 }
  0x9f   :  { %v38_v19 = vmax.f32 %v36_v13, %v37_v18  ;;  %v89_v48 = vrot.slane %v88_v45, 1 }
  0xa1   :  { %v39_v20 = vrot.slane %v38_v19, 1  ;;  %v90_v51 = vadd.f32 %v89_v48, %v88_v45 }
  0xa3   :  { %v40_v21 = vmax.f32 %v38_v19, %v39_v20 }
  0xa5   :  { %134 = vpush %v40_v21 }
  0xd6   :  { %s135_s1 = spop %134 }
  0xd7   :  { %s43_s27 = smax.f32 %s135_s1, %s273_s0 }
  0xd8   :  { %s44_s28 = smul.f32 0.5, %s43_s27 }
  0xda   :  { %s45_s29 = smul.f32 2.0, %s44_s28  ;;  %95 = sst [smem:[#allocation7]] %s44_s28  ;;  %v59_v29 = vstv %s44_s28 }
  0xdb   :  { %s52_s6 = smul.f32 %s44_s28, %s44_s28  ;;  %vm60_vm2 = vcmp.gt.f32.partialorder %v28_v6, %v59_v29  ;;  %vm61_vm3 = vcmp.gt.f32.partialorder %v29_v7, %v59_v29 }
  0xdc   :  { %s46_s30 = sadd.f32 1e-05, %s45_s29 }
  0xdd   :  { %v53_v26 = vstv %s52_s6 }
  0xde   :  { %v47_v22 = vstv %s46_s30  ;;  %v54_v27 = vadd.f32 %v53_v26, %v50_v24  ;;  %v55_v28 = vadd.f32 %v53_v26, %v51_v25 }
  0xdf   :  { %146 = vrcp.f32 %v47_v22 }
  0xe9   :  { %v147_v23 = vpop.eup %146 }
  0xea   :  { %136 = vpush %v147_v23 }
 0x11b   :  { %s137_s7 = spop %136 }
 0x11c   :  { %v56_v30 = vstv %s137_s7 }
 0x11d   :  { %v57_v31 = vmul.f32 %v56_v30, %v54_v27  ;;  %v58_v32 = vmul.f32 %v56_v30, %v55_v28 }
 0x11f   :  { %v62_v33 = vsel %vm60_vm2, %v57_v31, %v28_v6  ;;  %v63_v34 = vsel %vm61_vm3, %v58_v32, %v29_v7 }
 0x120   :  { %v64_v35 = vsel %vm24_vm0, %v62_v33, 0.0  ;;  %v65_v36 = vsel %vm25_vm1, %v63_v34, 0.0 }
 0x121   :  { %v66_v37 = vadd.f32 %v65_v36, %v64_v35 }
 0x123   :  { %67 = vadd.xlane.f32.xlu0 %v66_v37 }
 0x1b0   :  { %v68_v42 = vpop.xlane.xlu0 %67 }
 0x1b1   :  { %v69_v43 = vrot.slane %v68_v42, 4 }
 0x1b3   :  { %v70_v44 = vadd.f32 %v69_v43, %v68_v42 }
 0x1b5   :  { %v71_v46 = vrot.slane %v70_v44, 2 }
 0x1b7   :  { %v72_v47 = vadd.f32 %v71_v46, %v70_v44 }
 0x1b9   :  { %v73_v49 = vrot.slane %v72_v47, 1 }
 0x1bb   :  { %v74_v50 = vadd.f32 %v73_v49, %v72_v47 }
 0x1bd   :  { %138 = vpush %v74_v50 }
 0x1be   :  { %140 = vpush %v90_v51 }
 0x1ee   :  { %s139_s0 = spop %138 }
 0x1ef   :  { %s141_s8 = spop %140  ;;  %77 = sst [smem:[#allocation3]] %s139_s0 }
 0x1f0   :  { %93 = sst [smem:[#allocation5]] %s141_s8 }
 0x1f1   :  { %157 = shalt.err (!%p154_p2)
}
 0x1f2   :  { %s183_s16 = smov [#allocation5]   ;;  %s158_s21 = scalar_lea.hbm %s276_s3, 16 }
 0x1f3   :  { %111 = dma.smem_to_hbm %s183_s16, 16, %s277_s4, [#allocation6]  }
 0x1f4   :  { %p159_p3 = scmp.ne.s32.totalorder %s276_s3, %s158_s21  ;;  %p162_p4 = scmp.lt.u32.totalorder %s158_s21, %s276_s3 }
 0x1f6   :  { %p164_p5 = pnand %p162_p4, %p159_p3 }
 0x1f8   :  { %167 = shalt.err (!%p164_p5)
}
 0x1f9   :  { %s184_s1 = smov [#allocation3]   ;;  %s168_s28 = scalar_lea.hbm %s278_s5, 16 }
 0x1fa   :  { %103 = dma.smem_to_hbm %s184_s1, 16, %s276_s3, [#allocation4]  }
 0x1fb   :  { %p169_p6 = scmp.ne.s32.totalorder %s278_s5, %s168_s28  ;;  %p172_p7 = scmp.lt.u32.totalorder %s168_s28, %s278_s5 }
 0x1fd   :  { %p174_p8 = pnand %p172_p7, %p169_p6 }
 0x1ff   :  { %177 = shalt.err (!%p174_p8)
}
 0x200   :  { %s185_s0 = smov [#allocation7]  }
 0x201   :  { %119 = dma.smem_to_hbm %s185_s0, 16, %s278_s5, [#allocation6]  }
 0x202   :  { %178 = dma.done.wait [#allocation4], 16  }
 0x203   :  { %179 = vsyncadd [#allocation4], 4294967280 }
 0x204   :  { %180 = dma.done.wait [#allocation6], 32  }
 0x205   :  { %181 = vsyncadd [#allocation6], 4294967264 }
 0x206   :  { %129 = sfence }
 0x207   :  { %130 = vsyncpa [#allocation4], 1 }
 0x208   :  { %131 = vsyncpa [#allocation6], 1 }

</bundles_post_ra>
